<compile_context>
chip_gen: v7x
topology: tpu7x:2x2x1
jax: 0.10.0
libtpu: 0.0.40
codegen_flags: <defaults>
</compile_context>

<pallas_src>
import numpy as np
import jax
import jax.numpy as jnp
from jax.experimental import pallas as pl
from jax.experimental.pallas import tpu as pltpu


# ----------------------------------------------------------------------------
# Host-side construction of the per-scale linear operators (deterministic,
# derived from the module's __init__: AvgPool2d(2**s, 2**s) + sobel/8).
# ----------------------------------------------------------------------------
def _round_up(x, m):
    return ((x + m - 1) // m) * m


def _cdiv(a, b):
    return -(-a // b)


def _avgpool_matrix(n, k):
    nk = n // k
    m = np.zeros((nk, n), np.float32)
    for i in range(nk):
        m[i, i * k:(i + 1) * k] = 1.0 / k
    return m


def _smooth_matrix(n):
    # [1, 2, 1] smoothing with replicate padding, as an (n, n) matrix.
    s = np.zeros((n, n), np.float32)
    for i in range(n):
        s[i, max(i - 1, 0)] += 1.0
        s[i, i] += 2.0
        s[i, min(i + 1, n - 1)] += 1.0
    return s


def _deriv_matrix(n):
    # [-1, 0, 1] central difference with replicate padding, as an (n, n) matrix.
    d = np.zeros((n, n), np.float32)
    for i in range(n):
        d[i, min(i + 1, n - 1)] += 1.0
        d[i, max(i - 1, 0)] -= 1.0
    return d


def _build_scale_operators(H, W, HP, WP, HK, WK, start_scale, num_scales):
    """A[s,d] @ (X @ Bt[s, :, d*WK:(d+1)*WK]) == grad_d of AvgPool2d(k,k)(X)
    under kornia's normalized sobel spatial_gradient, already scaled by
    1/(hk*wk) (the spatial mean of the torch loss).  Rows/cols past the valid
    (hk, wk) region are zero, so |.|-sums over the trimmed padded result equal
    the sums over the valid region."""
    A = np.zeros((num_scales, 2, HK, HP), np.float32)
    Bt = np.zeros((num_scales, WP, 2 * WK), np.float32)
    for s in range(num_scales):
        k = start_scale * (2 ** s)
        hk, wk = H // k, W // k
        pr = _avgpool_matrix(H, k)          # (hk, H)
        pc = _avgpool_matrix(W, k)          # (wk, W)
        scale = 1.0 / (8.0 * hk * wk)       # 1/8: sobel L1 norm, 1/(hk*wk): mean
        a_x = _smooth_matrix(hk) @ pr * scale   # (hk, H)
        a_y = _deriv_matrix(hk) @ pr * scale    # (hk, H)
        b_x = _deriv_matrix(wk) @ pc            # (wk, W)
        b_y = _smooth_matrix(wk) @ pc           # (wk, W)
        A[s, 0, :hk, :H] = a_x
        A[s, 1, :hk, :H] = a_y
        Bt[s, :W, :wk] = b_x.T                  # direction x -> cols [0, WK)
        Bt[s, :W, WK:WK + wk] = b_y.T           # direction y -> cols [WK, 2WK)
    return jnp.asarray(A, jnp.bfloat16), jnp.asarray(Bt, jnp.bfloat16)


# ----------------------------------------------------------------------------
# Pallas kernel.  grid = (bc_tiles, num_scales); output block per bc tile is a
# resident accumulator across the inner "arbitrary" scale axis (P3 pattern).
# ----------------------------------------------------------------------------
def _msg_kernel(a_ref, bt_ref, diff_ref, out_ref):
    @pl.when(pl.program_id(1) == 0)
    def _():
        out_ref[...] = jnp.zeros_like(out_ref)

    hp = a_ref.shape[2]                 # padded image height
    wk = bt_ref.shape[1] // 2           # trimmed gradient width (per direction)
    n_img = diff_ref.shape[0] // hp     # images in this bc tile

    # One big right matmul: all images in the tile (M = n_img*hp) and both
    # gradient directions (N = 2*wk) in a single bf16 MXU pass, f32 accumulate.
    z = jnp.dot(diff_ref[...], bt_ref[...],
                preferred_element_type=jnp.float32).astype(jnp.bfloat16)

    a_x = a_ref[0]                      # (HK, HP) bf16
    a_y = a_ref[1]

    acc = jnp.zeros((), jnp.float32)
    # Static unroll over the (small) bc tile: per-iteration temporaries are now
    # only (HK, WK) — the big matmul was hoisted out of the loop.
    for i in range(n_img):
        zi = z[i * hp:(i + 1) * hp, :]  # (HP, 2*WK), tile-aligned static slice
        gx = jnp.dot(a_x, zi[:, :wk], preferred_element_type=jnp.float32)
        gy = jnp.dot(a_y, zi[:, wk:], preferred_element_type=jnp.float32)
        acc = acc + jnp.sum(jnp.abs(gx) + jnp.abs(gy))

    out_ref[...] += acc                 # broadcast scalar over the (8,128) block


def multi_scale_gradient_loss(prediction, target, start_scale=1, num_scales=4):
    B, C, H, W = prediction.shape
    k_max = start_scale * (2 ** (num_scales - 1))
    assert H % k_max == 0 and W % k_max == 0, (
        "H and W must be divisible by start_scale * 2**(num_scales-1)")

    HP = _round_up(H, 16)                       # bf16 sublane pack
    WP = _round_up(W, 128)                      # lane dim
    HK = _round_up(H // start_scale, 16)        # trimmed gradient height (max)
    WK = _round_up(W // start_scale, 128)       # trimmed gradient width (max)
    A, Bt = _build_scale_operators(H, W, HP, WP, HK, WK, start_scale, num_scales)

    # diff computed once (not per scale); NaNs in target zero the diff,
    # matching `diff[target != target] = 0` in the torch module.
    diff = jnp.where(jnp.isnan(target), 0.0,
                     prediction.astype(jnp.float32) - target.astype(jnp.float32))
    diff = diff.reshape(B * C, H, W)

    BC = B * C
    # bc tiling: bound per-step VMEM (~4 MiB of bf16 diff per tile) and give the
    # v7x megacore a real 'parallel' axis (>= 2 tiles whenever BC > 1).
    bytes_per_img = HP * WP * 2
    bc_tile = max(1, min(BC, (4 * 1024 * 1024) // bytes_per_img))
    if BC > 1:
        bc_tile = min(bc_tile, _cdiv(BC, 2))
    n_tiles = _cdiv(BC, bc_tile)
    bc_pad = n_tiles * bc_tile

    diff = jnp.pad(diff, ((0, bc_pad - BC), (0, HP - H), (0, WP - W)))
    diff_flat = diff.reshape(bc_pad * HP, WP).astype(jnp.bfloat16)

    partial = pl.pallas_call(
        _msg_kernel,
        out_shape=jax.ShapeDtypeStruct((n_tiles * 8, 128), jnp.float32),
        grid_spec=pltpu.PrefetchScalarGridSpec(
            num_scalar_prefetch=0,
            grid=(n_tiles, num_scales),
            in_specs=[
                pl.BlockSpec((None, 2, HK, HP), lambda bc, s: (s, 0, 0, 0)),
                pl.BlockSpec((None, WP, 2 * WK), lambda bc, s: (s, 0, 0)),
                pl.BlockSpec((bc_tile * HP, WP), lambda bc, s: (bc, 0)),
            ],
            out_specs=pl.BlockSpec((8, 128), lambda bc, s: (bc, 0)),
        ),
        compiler_params=pltpu.CompilerParams(
            dimension_semantics=("parallel", "arbitrary"),
            vmem_limit_bytes=64 * 1024 * 1024),
    )(A, Bt, diff_flat)

    # Every element of a tile's (8,128) block holds that tile's partial sum.
    per_tile = partial.reshape(n_tiles, 8 * 128)[:, 0]
    return jnp.sum(per_tile) / num_scales


# ----------------------------------------------------------------------------
# Pure-JAX f32 reference (kornia spatial_gradient semantics spelled out).
# ----------------------------------------------------------------------------
def _reference_loss(prediction, target, start_scale=1, num_scales=4):
    diff = jnp.where(jnp.isnan(target), 0.0, prediction - target)
    kx = jnp.array([[-1., 0., 1.], [-2., 0., 2.], [-1., 0., 1.]],
                   jnp.float32) / 8.0
    ky = kx.T
    B, C, H, W = diff.shape
    total = jnp.float32(0.0)
    for s in range(num_scales):
        k = start_scale * (2 ** s)
        hk, wk = H // k, W // k
        pooled = diff.reshape(B, C, hk, k, wk, k).mean(axis=(3, 5))
        pad = jnp.pad(pooled, ((0, 0), (0, 0), (1, 1), (1, 1)), mode='edge')
        gx = jnp.zeros_like(pooled)
        gy = jnp.zeros_like(pooled)
        for di in range(3):
            for dj in range(3):
                win = pad[:, :, di:di + hk, dj:dj + wk]
                gx = gx + kx[di, dj] * win
                gy = gy + ky[di, dj] * win
        g = jnp.stack([gx, gy], axis=2)                  # (B, C, 2, hk, wk)
        total = total + jnp.abs(g).mean(axis=(3, 4)).sum()
    return total / num_scales


if __name__ == "__main__":
    key = jax.random.PRNGKey(0)
    k1, k2 = jax.random.split(key)
    B, C, H, W = 2, 4, 16, 16
    prediction = jax.random.normal(k1, (B, C, H, W), dtype=jnp.float32)
    target = jax.random.normal(k2, (B, C, H, W), dtype=jnp.float32)
    # a couple of NaNs in the target to exercise the diff[target != target] = 0 path
    target = target.at[0, 1, 3, 5].set(jnp.nan)
    target = target.at[1, 2, 7, 9].set(jnp.nan)

    loss = multi_scale_gradient_loss(prediction, target)
    loss = jax.block_until_ready(loss)

    ref = _reference_loss(prediction, target)
    assert jnp.allclose(loss, ref, rtol=2e-2, atol=1e-3), (float(loss), float(ref))
    print("KERNEL_OK")
</pallas_src>

<mosaic_0001>
module attributes {stable_mosaic.version = 11 : i64} {
  func.func @_msg_kernel(%arg0: i32, %arg1: i32, %arg2: memref<1x2x16x16xbf16, #tpu.memory_space<vmem>>, %arg3: memref<1x128x256xbf16, #tpu.memory_space<vmem>>, %arg4: memref<64x128xbf16, #tpu.memory_space<vmem>>, %arg5: memref<8x128xf32, #tpu.memory_space<vmem>>) attributes {dimension_semantics = [#tpu.dimension_semantics<parallel>, #tpu.dimension_semantics<arbitrary>], iteration_bounds = array<i64: 2, 4>, scalar_prefetch = 0 : i64, scratch_operands = 0 : i64, tpu.core_type = #tpu.core_type<tc>, window_params = [{transform_indices = @transform_0, window_bounds = array<i64: 1, 2, 16, 16>}, {transform_indices = @transform_1, window_bounds = array<i64: 1, 128, 256>}, {transform_indices = @transform_2, window_bounds = array<i64: 64, 128>}, {transform_indices = @transform_3, window_bounds = array<i64: 8, 128>}]} {
    %c0_i32 = arith.constant 0 : i32
    %0 = arith.cmpi eq, %arg1, %c0_i32 : i32
    %1 = arith.extui %0 : i1 to i32
    %c0_i32_0 = arith.constant 0 : i32
    %2 = arith.cmpi ne, %1, %c0_i32_0 : i32
    scf.if %2 {
      %cst_29 = arith.constant 0.000000e+00 : f32
      %68 = vector.broadcast %cst_29 : f32 to vector<8x128xf32>
      %c0_30 = arith.constant 0 : index
      %c0_31 = arith.constant 0 : index
      %69 = vector.load %arg5[%c0_30, %c0_31] : memref<8x128xf32, #tpu.memory_space<vmem>>, vector<8x128xf32>
      tpu.vector_store %arg5[%c0_30, %c0_31], %68 {strides = array<i32>} : memref<8x128xf32, #tpu.memory_space<vmem>>, vector<8x128xf32>,
    } else {
    }
    %c0 = arith.constant 0 : index
    %c0_1 = arith.constant 0 : index
    %3 = vector.load %arg4[%c0, %c0_1] : memref<64x128xbf16, #tpu.memory_space<vmem>>, vector<64x128xbf16>
    %c0_2 = arith.constant 0 : index
    %c0_3 = arith.constant 0 : index
    %c0_4 = arith.constant 0 : index
    %4 = vector.load %arg3[%c0_2, %c0_3, %c0_4] : memref<1x128x256xbf16, #tpu.memory_space<vmem>>, vector<1x128x256xbf16>
    %5 = vector.shape_cast %4 : vector<1x128x256xbf16> to vector<128x256xbf16>
    %cst = arith.constant dense<0.000000e+00> : vector<64x256xf32>
    %6 = tpu.matmul %3, %5, %cst {dimension_numbers = #tpu.dot_dimension_numbers<[1], [0], [0], [1], [0, 0, 1, 1], [], []>} : vector<64x128xbf16>, vector<128x256xbf16>, vector<64x256xf32> -> vector<64x256xf32>
    %7 = arith.truncf %6 : vector<64x256xf32> to vector<64x256xbf16>
    %c0_5 = arith.constant 0 : index
    %c0_6 = arith.constant 0 : index
    %c0_7 = arith.constant 0 : index
    %c0_8 = arith.constant 0 : index
    %8 = vector.load %arg2[%c0_5, %c0_6, %c0_7, %c0_8] : memref<1x2x16x16xbf16, #tpu.memory_space<vmem>>, vector<1x1x16x16xbf16>
    %9 = vector.shape_cast %8 : vector<1x1x16x16xbf16> to vector<16x16xbf16>
    %c0_9 = arith.constant 0 : index
    %c1 = arith.constant 1 : index
    %c0_10 = arith.constant 0 : index
    %c0_11 = arith.constant 0 : index
    %10 = vector.load %arg2[%c0_9, %c1, %c0_10, %c0_11] : memref<1x2x16x16xbf16, #tpu.memory_space<vmem>>, vector<1x1x16x16xbf16>
    %11 = vector.shape_cast %10 : vector<1x1x16x16xbf16> to vector<16x16xbf16>
    %12 = vector.extract_strided_slice %7 {offsets = [0, 0], sizes = [16, 256], strides = [1, 1]} : vector<64x256xbf16> to vector<16x256xbf16>
    %13 = vector.extract_strided_slice %12 {offsets = [0, 0], sizes = [16, 128], strides = [1, 1]} : vector<16x256xbf16> to vector<16x128xbf16>
    %cst_12 = arith.constant dense<0.000000e+00> : vector<16x128xf32>
    %14 = tpu.matmul %9, %13, %cst_12 {dimension_numbers = #tpu.dot_dimension_numbers<[1], [0], [0], [1], [0, 0, 1, 1], [], []>} : vector<16x16xbf16>, vector<16x128xbf16>, vector<16x128xf32> -> vector<16x128xf32>
    %15 = vector.extract_strided_slice %12 {offsets = [0, 128], sizes = [16, 128], strides = [1, 1]} : vector<16x256xbf16> to vector<16x128xbf16>
    %cst_13 = arith.constant dense<0.000000e+00> : vector<16x128xf32>
    %16 = tpu.matmul %11, %15, %cst_13 {dimension_numbers = #tpu.dot_dimension_numbers<[1], [0], [0], [1], [0, 0, 1, 1], [], []>} : vector<16x16xbf16>, vector<16x128xbf16>, vector<16x128xf32> -> vector<16x128xf32>
    %17 = math.absf %14 : vector<16x128xf32>
    %18 = math.absf %16 : vector<16x128xf32>
    %19 = arith.addf %17, %18 : vector<16x128xf32>
    %20 = vector.shape_cast %19 : vector<16x128xf32> to vector<1x16x128xf32>
    %cst_14 = arith.constant dense<0.000000e+00> : vector<1xf32>
    %21 = vector.multi_reduction <add>, %20, %cst_14 [1, 2] : vector<1x16x128xf32> to vector<1xf32>
    %22 = vector.shape_cast %21 : vector<1xf32> to vector<1x1x1xf32>
    %23 = vector.extract %22[0, 0, 0] : f32 from vector<1x1x1xf32>
    %cst_15 = arith.constant 0.000000e+00 : f32
    %24 = arith.addf %cst_15, %23 : f32
    %25 = vector.extract_strided_slice %7 {offsets = [16, 0], sizes = [16, 256], strides = [1, 1]} : vector<64x256xbf16> to vector<16x256xbf16>
    %26 = vector.extract_strided_slice %25 {offsets = [0, 0], sizes = [16, 128], strides = [1, 1]} : vector<16x256xbf16> to vector<16x128xbf16>
    %cst_16 = arith.constant dense<0.000000e+00> : vector<16x128xf32>
    %27 = tpu.matmul %9, %26, %cst_16 {dimension_numbers = #tpu.dot_dimension_numbers<[1], [0], [0], [1], [0, 0, 1, 1], [], []>} : vector<16x16xbf16>, vector<16x128xbf16>, vector<16x128xf32> -> vector<16x128xf32>
    %28 = vector.extract_strided_slice %25 {offsets = [0, 128], sizes = [16, 128], strides = [1, 1]} : vector<16x256xbf16> to vector<16x128xbf16>
    %cst_17 = arith.constant dense<0.000000e+00> : vector<16x128xf32>
    %29 = tpu.matmul %11, %28, %cst_17 {dimension_numbers = #tpu.dot_dimension_numbers<[1], [0], [0], [1], [0, 0, 1, 1], [], []>} : vector<16x16xbf16>, vector<16x128xbf16>, vector<16x128xf32> -> vector<16x128xf32>
    %30 = math.absf %27 : vector<16x128xf32>
    %31 = math.absf %29 : vector<16x128xf32>
    %32 = arith.addf %30, %31 : vector<16x128xf32>
    %33 = vector.shape_cast %32 : vector<16x128xf32> to vector<1x16x128xf32>
    %cst_18 = arith.constant dense<0.000000e+00> : vector<1xf32>
    %34 = vector.multi_reduction <add>, %33, %cst_18 [1, 2] : vector<1x16x128xf32> to vector<1xf32>
    %35 = vector.shape_cast %34 : vector<1xf32> to vector<1x1x1xf32>
    %36 = vector.extract %35[0, 0, 0] : f32 from vector<1x1x1xf32>
    %37 = arith.addf %24, %36 : f32
    %38 = vector.extract_strided_slice %7 {offsets = [32, 0], sizes = [16, 256], strides = [1, 1]} : vector<64x256xbf16> to vector<16x256xbf16>
    %39 = vector.extract_strided_slice %38 {offsets = [0, 0], sizes = [16, 128], strides = [1, 1]} : vector<16x256xbf16> to vector<16x128xbf16>
    %cst_19 = arith.constant dense<0.000000e+00> : vector<16x128xf32>
    %40 = tpu.matmul %9, %39, %cst_19 {dimension_numbers = #tpu.dot_dimension_numbers<[1], [0], [0], [1], [0, 0, 1, 1], [], []>} : vector<16x16xbf16>, vector<16x128xbf16>, vector<16x128xf32> -> vector<16x128xf32>
    %41 = vector.extract_strided_slice %38 {offsets = [0, 128], sizes = [16, 128], strides = [1, 1]} : vector<16x256xbf16> to vector<16x128xbf16>
    %cst_20 = arith.constant dense<0.000000e+00> : vector<16x128xf32>
    %42 = tpu.matmul %11, %41, %cst_20 {dimension_numbers = #tpu.dot_dimension_numbers<[1], [0], [0], [1], [0, 0, 1, 1], [], []>} : vector<16x16xbf16>, vector<16x128xbf16>, vector<16x128xf32> -> vector<16x128xf32>
    %43 = math.absf %40 : vector<16x128xf32>
    %44 = math.absf %42 : vector<16x128xf32>
    %45 = arith.addf %43, %44 : vector<16x128xf32>
    %46 = vector.shape_cast %45 : vector<16x128xf32> to vector<1x16x128xf32>
    %cst_21 = arith.constant dense<0.000000e+00> : vector<1xf32>
    %47 = vector.multi_reduction <add>, %46, %cst_21 [1, 2] : vector<1x16x128xf32> to vector<1xf32>
    %48 = vector.shape_cast %47 : vector<1xf32> to vector<1x1x1xf32>
    %49 = vector.extract %48[0, 0, 0] : f32 from vector<1x1x1xf32>
    %50 = arith.addf %37, %49 : f32
    %51 = vector.extract_strided_slice %7 {offsets = [48, 0], sizes = [16, 256], strides = [1, 1]} : vector<64x256xbf16> to vector<16x256xbf16>
    %52 = vector.extract_strided_slice %51 {offsets = [0, 0], sizes = [16, 128], strides = [1, 1]} : vector<16x256xbf16> to vector<16x128xbf16>
    %cst_22 = arith.constant dense<0.000000e+00> : vector<16x128xf32>
    %53 = tpu.matmul %9, %52, %cst_22 {dimension_numbers = #tpu.dot_dimension_numbers<[1], [0], [0], [1], [0, 0, 1, 1], [], []>} : vector<16x16xbf16>, vector<16x128xbf16>, vector<16x128xf32> -> vector<16x128xf32>
    %54 = vector.extract_strided_slice %51 {offsets = [0, 128], sizes = [16, 128], strides = [1, 1]} : vector<16x256xbf16> to vector<16x128xbf16>
    %cst_23 = arith.constant dense<0.000000e+00> : vector<16x128xf32>
    %55 = tpu.matmul %11, %54, %cst_23 {dimension_numbers = #tpu.dot_dimension_numbers<[1], [0], [0], [1], [0, 0, 1, 1], [], []>} : vector<16x16xbf16>, vector<16x128xbf16>, vector<16x128xf32> -> vector<16x128xf32>
    %56 = math.absf %53 : vector<16x128xf32>
    %57 = math.absf %55 : vector<16x128xf32>
    %58 = arith.addf %56, %57 : vector<16x128xf32>
    %59 = vector.shape_cast %58 : vector<16x128xf32> to vector<1x16x128xf32>
    %cst_24 = arith.constant dense<0.000000e+00> : vector<1xf32>
    %60 = vector.multi_reduction <add>, %59, %cst_24 [1, 2] : vector<1x16x128xf32> to vector<1xf32>
    %61 = vector.shape_cast %60 : vector<1xf32> to vector<1x1x1xf32>
    %62 = vector.extract %61[0, 0, 0] : f32 from vector<1x1x1xf32>
    %63 = arith.addf %50, %62 : f32
    %c0_25 = arith.constant 0 : index
    %c0_26 = arith.constant 0 : index
    %64 = vector.load %arg5[%c0_25, %c0_26] : memref<8x128xf32, #tpu.memory_space<vmem>>, vector<8x128xf32>
    %65 = vector.broadcast %63 : f32 to vector<8x128xf32>
    %66 = arith.addf %64, %65 : vector<8x128xf32>
    %c0_27 = arith.constant 0 : index
    %c0_28 = arith.constant 0 : index
    %67 = vector.load %arg5[%c0_27, %c0_28] : memref<8x128xf32, #tpu.memory_space<vmem>>, vector<8x128xf32>
    tpu.vector_store %arg5[%c0_27, %c0_28], %66 {strides = array<i32>} : memref<8x128xf32, #tpu.memory_space<vmem>>, vector<8x128xf32>,
    return
  }
  func.func @transform_0(%arg0: i32, %arg1: i32) -> (i32, i32, i32, i32) {
    %c0_i32 = arith.constant 0 : i32
    %c0_i32_0 = arith.constant 0 : i32
    %c0_i32_1 = arith.constant 0 : i32
    %c0_i32_2 = arith.constant 0 : i32
    return %arg1, %c0_i32, %c0_i32_0, %c0_i32_1 : i32, i32, i32, i32
  }
  func.func @transform_1(%arg0: i32, %arg1: i32) -> (i32, i32, i32) {
    %c0_i32 = arith.constant 0 : i32
    %c0_i32_0 = arith.constant 0 : i32
    %c0_i32_1 = arith.constant 0 : i32
    return %arg1, %c0_i32, %c0_i32_0 : i32, i32, i32
  }
  func.func @transform_2(%arg0: i32, %arg1: i32) -> (i32, i32) {
    %c0_i32 = arith.constant 0 : i32
    %c0_i32_0 = arith.constant 0 : i32
    return %arg0, %c0_i32 : i32, i32
  }
  func.func @transform_3(%arg0: i32, %arg1: i32) -> (i32, i32) {
    %c0_i32 = arith.constant 0 : i32
    %c0_i32_0 = arith.constant 0 : i32
    return %arg0, %c0_i32 : i32, i32
  }
}

</mosaic_0001>

<bundles_post_ra>
// kernel: tpu_custom_call.1
= control target key start
LH: loop header
LB: loop body
LE: loop exit
PB: predicated region body
PF: predicated region fallthrough
CT: control target
= control target key end

     0   :  { %s1989_s0 = inlined_call_operand.hbm [shape: bf16[4,2,16,16], index: 0, kind: input, shape index: {}]   ;;  %s1990_s1 = inlined_call_operand.hbm [shape: bf16[4,128,256], index: 1, kind: input, shape index: {}]   ;;  %s1991_s2 = inlined_call_operand.hbm [shape: bf16[128,128], index: 2, kind: input, shape index: {}]   ;;  %s1992_s3 = inlined_call_operand.hbm [shape: f32[16,128], index: 3, kind: output, shape index: {}]  }
   0x1   :  { %2002 = sst [smem:[#allocation16_spill]] %s1989_s0 }
   0x2   :  { %2003 = sst [smem:[#allocation17_spill]] %s1990_s1 }
   0x3   :  { %8 = vsyncpa [#allocation3], 0 }
   0x4   :  { %10 = vsyncpa [#allocation3 + $0x1], 0 }
   0x5   :  { %11 = vsyncpa [#allocation6], 0 }
   0x6   :  { %13 = vsyncpa [#allocation6 + $0x1], 0 }
   0x7   :  { %14 = vsyncpa [#allocation4], 0 }
   0x8   :  { %16 = vsyncpa [#allocation4 + $0x1], 0  ;;  %s1588_s12 = smov 0   ;;  %s1590_s13 = smov 0  }
   0x9   :  { %s1592_s14 = smov 0   ;;  %s1594_s15 = smov 0  }
   0xa   :  { %s1596_s16 = smov 0   ;;  %s1598_s17 = smov 0  }
   0xb   :  { %s1600_s18 = smov 0   ;;  %s1602_s19 = smov 0  }
   0xc   :  { %s1604_s20 = smov 0   ;;  %s1606_s21 = smov 0  }
   0xd   :  { %s1608_s22 = smov 0  }
   0xe LB: > { %s1642_s23 = sadd.s32 4294967295, %s1554_s22   ;;  %s31_s24 = sadd.s32 1, %s1546_s20  ;;  %s1554_s22 = sphi %s1608_s22, %s22_s22   ;;  %s1550_s21 = sphi %s1606_s21, %s2040_s21   ;;  %s1546_s20 = sphi %s1604_s20, %s2039_s20   ;;  %s1542_s19 = sphi %s1602_s19, %s2038_s19   ;;  %s1538_s18 = sphi %s1600_s18, %s2037_s18   ;;  %s1534_s17 = sphi %s1598_s17, %s2036_s17   ;;  %s1530_s16 = sphi %s1596_s16, %s2035_s16   ;;  %s1526_s15 = sphi %s1594_s15, %s2034_s15   ;;  %s1522_s14 = sphi %s1592_s14, %s2033_s14   ;;  %s1518_s13 = sphi %s1590_s13, %s2032_s13   ;;  %s1514_s12 = sphi %s1588_s12, %s2031_s12  }
   0xf   : > { %p1645_p0 = scmp.ge.s32.totalorder %s31_s24, 4  ;;  %s41_s26 = sadd.s32 1, %s1534_s17 }
  0x10   : > { %p48_p1 = scmp.ne.s32.totalorder %s1534_s17, %s1530_s16  ;;  %p1996_p2 = scmp.eq.s32.totalorder %s1554_s22, 0 }
  0x11   : > { %s2042_s24 = smov (%p1645_p0, %s31_s24), 0  ;;  %p54_p4 = scmp.ne.s32.totalorder %s1530_s16, %s1526_s15 }
  0x12   : > { %2005 = sst [smem:[#allocation13_spill]] %s2042_s24  ;;  %p50_p3 = por %p1996_p2, %p48_p1 }
  0x13   : > { %s38_s27 = ssub.s32 %s1546_s20, %s2042_s24  ;;  %p1995_p5 = scmp.eq.s32.totalorder %s1642_s23, 0 }
  0x14   : > { %p39_p6 = scmp.eq.s32.totalorder %s38_s27, 0  ;;  %p1994_p8 = scmp.lt.s32.totalorder %s1554_s22, 8 }
  0x15   : > { %p1665_p7 = por %p1995_p5, %p54_p4  ;;  %s1674_s30 = sand.u32 1, %s1534_s17  }
  0x16   : > { %s1671_s29 = scalar_select %p39_p6, %s1534_s17, %s41_s26  }
  0x17   : > { %s2006_s28 = scalar_select %p1665_p7, 1, 0 }
  0x18   : > { %2007 = sst [smem:[#allocation14_spill]] %s1671_s29  ;;  %p1678_p9 = pnand %p1994_p8, %p50_p3 }
  0x19   : > { %s177_s5 = sand.u32 1, %s1554_s22   ;;  %s1061_s6 = sshll.u32 %s1674_s30, 7 }
  0x1a   : > { %s1110_s7 = sshll.u32 %s1546_s20, 11  ;;  %s2009_s1 = sld [smem:[#allocation17_spill]] }
  0x1b   : > { %s181_s11 = scalar_lea.vmem [#allocation5], %s1061_s6  ;;  %s1693_s26 = scalar_lea.sflag [#allocation6], %s177_s5 }
  0x1c   : > { %s188_s15 = sshll.u32 %s181_s11, 4  ;;  %p1336_p12 = pneg %p1678_p9  ;;  %s1690_s15 = int_to_ptr.vmem [resolvable:$true] %s188_s15 }
  0x20   : > { %s1688_s10 = scalar_lea.hbm %s2009_s1, %s1110_s7  ;;  %s1339_s9 = scalar_lea.hbm %s2009_s1, 8192 }
  0x21   : > { %s1334_s27 = scalar_lea.hbm %s1688_s10, 2048  ;;  %p1340_p3 = scmp.lt.u32.totalorder %s1688_s10, %s2009_s1 }
  0x22   : > { %p1335_p11 = scmp.ne.s32.totalorder %s1688_s10, %s1334_s27  ;;  %p1341_p4 = scmp.lt.u32.totalorder %s1339_s9, %s1334_s27 }
  0x23   : > { %p1343_p8 = scmp.lt.u32.totalorder %s1334_s27, %s1688_s10 }
  0x24   : > { %p1337_p13 = pnand %p1336_p12, %p1335_p11  ;;  %p1342_p6 = por %p1341_p4, %p1340_p3 }
  0x26   : > { %p1338_p1 = pneg %p1337_p13  ;;  %p1344_p5 = por %p1343_p8, %p1342_p6 }
  0x28   : > { %p1345_p2 = pnand %p1344_p5, %p1338_p1 }
  0x2a   : > { %1348 = shalt.err (!%p1345_p2)
}
  0x2b   : > { %s1349_s5 = scalar_lea.vmem %s1690_s15, 2048  ;;  %s1556_s11 = smov [#allocation5]  }
  0x2c   : > { %p1350_p11 = scmp.ne.s32.totalorder %s1690_s15, %s1349_s5  ;;  %s1354_s7 = sshll.u32 %s1556_s11, 4  ;;  %s1355_s7 = int_to_ptr.vmem [resolvable:$false] %s1354_s7 }
  0x2d   : > { %s1356_s24 = scalar_lea.vmem %s1355_s7, 4096  ;;  %p1357_p7 = scmp.lt.s32.totalorder %s1690_s15, %s1355_s7 }
  0x2e   : > { %p1352_p13 = pnand %p1350_p11, %p1336_p12  ;;  %p1358_p3 = scmp.lt.s32.totalorder %s1356_s24, %s1349_s5 }
  0x30   : > { %p1353_p10 = pneg %p1352_p13  ;;  %p1359_p4 = por %p1358_p3, %p1357_p7 }
  0x32   : > { %p1360_p8 = pnand %p1359_p4, %p1353_p10 }
  0x34   : > { %1363 = shalt.err (!%p1360_p8)
}
  0x35   : > { %s1557_s27 = smov 128   ;;  %s1558_s8 = smov 8  }
  0x36   : > { %1198 = dma.hbm_to_vmem [thread:$0]  (!%p1678_p9), %s1688_s10, 2048, %s1690_s15, %s1693_s26, %s1557_s27, %s1557_s27, %s1558_s8  }
  0x37   : > { %p217_p2 = scmp.lt.s32.totalorder %s1554_s22, 9  ;;  %p2010_p5 = scmp.ge.s32.totalorder %s1554_s22, 1 }
  0x38   : > { %s1058_s6 = sshll.u32 %s1674_s30, 4  ;;  %s1109_s5 = sshll.u32 %s1546_s20, 8 }
  0x39   : > { %p1724_p1 = pnand %p2010_p5, %p217_p2  ;;  %s2012_s0 = sld [smem:[#allocation16_spill]] }
  0x3a   : > { %s160_s1 = scalar_lea.vmem [#allocation2], %s1058_s6  ;;  %s157_s10 = scalar_lea.sflag [#allocation3], %s1674_s30 }
  0x3b   : > { %s2011_s9 = scalar_select %p1724_p1, 1, 0 }
  0x3c   : > { %s167_s29 = sshll.u32 %s160_s1, 4  ;;  %s1735_s29 = int_to_ptr.vmem [resolvable:$true] %s167_s29 }
  0x3f   : > { %s1733_s24 = scalar_lea.hbm %s2012_s0, %s1109_s5  ;;  %s1369_s5 = scalar_lea.hbm %s2012_s0, 1024 }
  0x40   : > { %s1364_s15 = scalar_lea.hbm %s1733_s24, 256  ;;  %p1370_p11 = scmp.lt.u32.totalorder %s1733_s24, %s2012_s0 }
  0x41   : > { %p1365_p7 = scmp.ne.s32.totalorder %s1733_s24, %s1364_s15  ;;  %p1371_p13 = scmp.lt.u32.totalorder %s1369_s5, %s1364_s15 }
  0x42   : > { %p1373_p4 = scmp.lt.u32.totalorder %s1364_s15, %s1733_s24 }
  0x43   : > { %p1367_p10 = pnand %p1365_p7, %p1336_p12  ;;  %p1372_p3 = por %p1371_p13, %p1370_p11 }
  0x45   : > { %p1368_p6 = pneg %p1367_p10  ;;  %p1374_p8 = por %p1373_p4, %p1372_p3 }
  0x47   : > { %p1375_p2 = pnand %p1374_p8, %p1368_p6 }
  0x49   : > { %1378 = shalt.err (!%p1375_p2)
}
  0x4a   : > { %s1379_s1 = scalar_lea.vmem %s1735_s29, 256  ;;  %s1559_s6 = smov [#allocation2]  }
  0x4b   : > { %p1380_p5 = scmp.ne.s32.totalorder %s1735_s29, %s1379_s1  ;;  %s1384_s27 = sshll.u32 %s1559_s6, 4  ;;  %s1385_s27 = int_to_ptr.vmem [resolvable:$false] %s1384_s27 }
  0x4c   : > { %s1386_s8 = scalar_lea.vmem %s1385_s27, 512  ;;  %p1387_p1 = scmp.lt.s32.totalorder %s1735_s29, %s1385_s27 }
  0x4d   : > { %p1382_p7 = pnand %p1380_p5, %p1336_p12  ;;  %p1388_p11 = scmp.lt.s32.totalorder %s1386_s8, %s1379_s1 }
  0x4f   : > { %p1383_p10 = pneg %p1382_p7  ;;  %p1389_p13 = por %p1388_p11, %p1387_p1 }
  0x51   : > { %p1390_p3 = pnand %p1389_p13, %p1383_p10 }
  0x53   : > { %1393 = shalt.err (!%p1390_p3)
}
  0x54   : > { %s1998_s15 = smov 64   ;;  %s1999_s5 = smov 4  }
  0x55   : > { %1195 = dma.hbm_to_vmem [thread:$0]  (!%p1678_p9), %s1733_s24, 256, %s1735_s29, %s157_s10, %s1998_s15, %s1998_s15, %s1999_s5  }
  0x56   : > { %s1055_s11 = sadd.s32 4294967294, %s1554_s22   ;;  %s34_s7 = sadd.s32 1, %s1550_s21 }
  0x57   : > { %s93_s1 = sadd.s32 1, %s1522_s14  ;;  %s2044_s7 = smov (!%p1645_p0, %s34_s7), %s1550_s21 }
  0x58   : > { %p100_p12 = scmp.ne.s32.totalorder %s1522_s14, %s1518_s13  ;;  %p106_p1 = scmp.ne.s32.totalorder %s1518_s13, %s1514_s12 }
  0x59   : > { %p36_p6 = scmp.ge.s32.totalorder %s2044_s7, 2  ;;  %p130_p4 = scmp.eq.s32.totalorder %s1642_s23, 7 }
  0x5a   : > { %p2013_p8 = scmp.eq.s32.totalorder %s1554_s22, 0  ;;  %p2015_p5 = scmp.eq.s32.totalorder %s1642_s23, 0 }
  0x5b   : > { %s2046_s7 = smov (%p36_p6, %s2044_s7), 0  ;;  %p1791_p0 = por %p130_p4, %p100_p12 }
  0x5c   : > { %p1779_p2 = por %p100_p12, %p2013_p8  ;;  %p1785_p9 = por %p106_p1, %p2015_p5 }
  0x5d   : > { %2017 = sst [smem:[#allocation15_spill]] %s2046_s7  ;;  %p136_p7 = scmp.eq.s32.totalorder %s1055_s11, 7 }
  0x5e   : > { %s2018_s25 = scalar_select %p1791_p0, 1, 0 }
  0x5f   : > { %s90_s30 = ssub.s32 %s1550_s21, %s2046_s7  ;;  %s200_s24 = sand.u32 1, %s1522_s14  }
  0x60   : > { %p91_p10 = scmp.eq.s32.totalorder %s90_s30, 0  ;;  %p1798_p11 = por %p136_p7, %p106_p1 }
  0x61   : > { %s1064_s6 = sshll.u32 %s200_s24, 5  ;;  %s1111_s27 = sshll.u32 %s1550_s21, 9 }
  0x62   : > { %s2019_s10 = scalar_select %p1798_p11, 1, 0 }
  0x63   : > { %s1804_s8 = scalar_select %p91_p10, %s1522_s14, %s93_s1  }
  0x64   : > { %s1809_s0 = scalar_lea.hbm %s1991_s2, %s1111_s27  ;;  %s202_s11 = scalar_lea.vmem [#allocation7], %s1064_s6 }
  0x65   : > { %s209_s7 = sshll.u32 %s202_s11, 4  ;;  %p2020_p13 = scmp.lt.s32.totalorder %s1554_s22, 8  ;;  %s1819_s7 = int_to_ptr.vmem [resolvable:$true] %s209_s7 }
  0x66   : > { %s1394_s1 = scalar_lea.hbm %s1809_s0, 512  ;;  %s1399_s4 = scalar_lea.hbm %s1991_s2, 1024 }
  0x67   : > { %p1815_p3 = pnand %p2020_p13, %p1779_p2  ;;  %p1395_p12 = scmp.ne.s32.totalorder %s1809_s0, %s1394_s1 }
  0x68   : > { %p1400_p8 = scmp.lt.u32.totalorder %s1809_s0, %s1991_s2  ;;  %p1401_p2 = scmp.lt.u32.totalorder %s1399_s4, %s1394_s1 }
  0x69   : > { %p1396_p1 = pneg %p1815_p3  ;;  %p1403_p7 = scmp.lt.u32.totalorder %s1394_s1, %s1809_s0 }
  0x6a   : > { %p1402_p5 = por %p1401_p2, %p1400_p8 }
  0x6b   : > { %p1397_p6 = pnand %p1396_p1, %p1395_p12 }
  0x6c   : > { %p1404_p10 = por %p1403_p7, %p1402_p5 }
  0x6d   : > { %p1398_p4 = pneg %p1397_p6 }
  0x6f   : > { %p1405_p13 = pnand %p1404_p10, %p1398_p4 }
  0x71   : > { %1408 = shalt.err (!%p1405_p13)
}
  0x72   : > { %s1409_s27 = scalar_lea.vmem %s1819_s7, 512  ;;  %s1562_s11 = smov [#allocation7]  }
  0x73   : > { %p1410_p12 = scmp.ne.s32.totalorder %s1819_s7, %s1409_s27  ;;  %s1414_s15 = sshll.u32 %s1562_s11, 4  ;;  %s1415_s15 = int_to_ptr.vmem [resolvable:$false] %s1414_s15 }
  0x74   : > { %s1416_s5 = scalar_lea.vmem %s1415_s15, 1024  ;;  %p1417_p0 = scmp.lt.s32.totalorder %s1819_s7, %s1415_s15 }
  0x75   : > { %p1412_p6 = pnand %p1410_p12, %p1396_p1  ;;  %p1418_p8 = scmp.lt.s32.totalorder %s1416_s5, %s1409_s27 }
  0x77   : > { %p1413_p11 = pneg %p1412_p6  ;;  %p1419_p2 = por %p1418_p8, %p1417_p0 }
  0x79   : > { %p1420_p5 = pnand %p1419_p2, %p1413_p11 }
  0x7b   : > { %1423 = shalt.err (!%p1420_p5)
}
  0x7c   : > { %s2022_s1 = smov 4   ;;  %s2023_s4 = smov 64  }
  0x7d   : > { %1201 = dma.hbm_to_vmem [thread:$0]  (!%p1815_p3), %s1809_s0, 512, %s1819_s7, %s1693_s26, %s2023_s4, %s2023_s4, %s2022_s1  }
  0x7e   : > { %p2024_p1 = scmp.ne.s32.totalorder %s2011_s9, 0 }
  0x7f   : > { %s223_s24 = sand.u32 (!%p2024_p1), 1, %s1530_s16   ;;  %p2025_p0 = scmp.ne.s32.totalorder (!%p2024_p1), %s2006_s28, 0 }
  0x80   : > { %221 = sbr.rel (%p2024_p1) target bundleno = 903 (0x387), region = 32  ;;  %s1068_s6 = sshll.u32 (!%p2024_p1), %s223_s24, 4 }
  0x81   : > { %s224_s27 = scalar_lea.sflag (!%p2024_p1), [#allocation3], %s223_s24  ;;  %s1853_s11 = scalar_lea.vmem (!%p2024_p1), [#allocation2], %s1068_s6 }
  0x87   : > { %1497 = dma.done.wait (%p2025_p0), %s224_s27, 256  }
  0x88   : > { %1499 = vsyncadd (%p2025_p0), %s224_s27, 4294967040  ;;  %s232_s30 = sand.u32 1, %s1642_s23   ;;  %s1069_s15 = sshll.u32 %s223_s24, 7 }
  0x89   : > { %s233_s0 = scalar_lea.sflag [#allocation6], %s232_s30  ;;  %s1860_s26 = scalar_lea.vmem [#allocation5], %s1069_s15 }
  0x8a   : > { %1501 = dma.done.wait (%p2025_p0), %s233_s0, 2048  }
  0x8b   : > { %1503 = vsyncadd (%p2025_p0), %s233_s0, 4294965248  ;;  %s1867_s9 = sand.u32 1, %s1518_s13  }
  0x8c   : > { %s1070_s7 = sshll.u32 %s1867_s9, 5 }
  0x8d   : > { %s1870_s5 = scalar_lea.vmem [#allocation7], %s1070_s7 }
  0x8e   : > { %1505 = dma.done.wait (%p1785_p9), %s233_s0, 512  }
  0x8f   : > { %1507 = vsyncadd (%p1785_p9), %s233_s0, 4294966784  ;;  %s1071_s23 = sshll.u32 %s1867_s9, 3  ;;  %p1072_p11 = scmp.ne.s32.totalorder %s1538_s18, 0 }
  0x90   : > { %s1877_s1 = scalar_lea.vmem [#allocation8], %s1071_s23  ;;  %v1563_v0 = vmov (!%p1072_p11), 0.0  }
  0x91   : > { %283 = sbr.rel (%p1072_p11) target bundleno = 152 (0x98), region = 48  ;;  %284 = vst [vmem:[%s1877_s1] sm:$0xff] (!%p1072_p11), %v1563_v0 }
  0x98 PF: > { %v1304_v1 = vld [vmem:[%s1860_s26 + $0x4] ss:$8 sps:$4 sm:$0xff]   ;;  %v1306_v2 = vld [vmem:[%s1860_s26] ss:$8 sps:$4 sm:$0xff]   ;;  %v1564_v3 = vmov 0   ;;  %v1330_v20 = vld [vmem:[%s1870_s5 + $0x10] sm:$0xff]  }
  0x99   : > { %445 = vmatprep.mubr.bf16.mxu0 %v1564_v3  ;;  %413 = vmatprep.subr.bf16.mxu0 %v1304_v1  ;;  %v1307_v4 = vld [vmem:[%s1860_s26 + $0x14] ss:$8 sps:$4 sm:$0xff]   ;;  %v1309_v5 = vld [vmem:[%s1860_s26 + $0x10] ss:$8 sps:$4 sm:$0xff]   ;;  %v1310_v6 = vld [vmem:[%s1860_s26 + $0x24] ss:$8 sps:$4 sm:$0xff]  }
  0x9a   : > { %414 = vmatpush1.bf16.msra.mxu0 %v1306_v2  ;;  %v1312_v7 = vld [vmem:[%s1860_s26 + $0x20] ss:$8 sps:$4 sm:$0xff]   ;;  %v1313_v8 = vld [vmem:[%s1860_s26 + $0x34] ss:$8 sps:$4 sm:$0xff]   ;;  %v1315_v9 = vld [vmem:[%s1860_s26 + $0x30] ss:$8 sps:$4 sm:$0xff]  }
  0x9b   : > { %415 = vmatprep.subr.bf16.mxu0 %v1307_v4  ;;  %v1316_v10 = vld [vmem:[%s1860_s26 + $0x44] ss:$8 sps:$4 sm:$0xff]   ;;  %v1318_v11 = vld [vmem:[%s1860_s26 + $0x40] ss:$8 sps:$4 sm:$0xff]   ;;  %v1319_v12 = vld [vmem:[%s1860_s26 + $0x54] ss:$8 sps:$4 sm:$0xff]  }
  0x9c   : > { %v1321_v13 = vld [vmem:[%s1860_s26 + $0x50] ss:$8 sps:$4 sm:$0xff]   ;;  %v1322_v14 = vld [vmem:[%s1860_s26 + $0x64] ss:$8 sps:$4 sm:$0xff]   ;;  %v1324_v15 = vld [vmem:[%s1860_s26 + $0x60] ss:$8 sps:$4 sm:$0xff]  }
  0x9d   : > { %v1325_v16 = vld [vmem:[%s1860_s26 + $0x74] ss:$8 sps:$4 sm:$0xff]   ;;  %v1327_v17 = vld [vmem:[%s1860_s26 + $0x70] ss:$8 sps:$4 sm:$0xff]   ;;  %v1328_v18 = vld [vmem:[%s1870_s5] sm:$0xff]   ;;  %v1565_v22 = vmov 0.0  }
  0x9e   : > { %416 = vmatpush1.bf16.msra.mxu0 %v1309_v5  ;;  %v1329_v19 = vld [vmem:[%s1870_s5 + $0x8] sm:$0xff]   ;;  %v1331_v21 = vld [vmem:[%s1870_s5 + $0x18] sm:$0xff]   ;;  %1128 = vmatprep.subr.bf16.mxu1 %v1565_v22  ;;  %vm1566_vm0 = vmmov 0   ;;  %v1332_v29 = vld [vmem:[%s1853_s11] sm:$0xff]   ;;  %vm504_vm1 = vcmask 130048   ;;  %s1106_s27 = sshll.u32 %s1542_s19, 7 }
  0x9f   : > { %417 = vmatprep.subr.bf16.mxu0 %v1310_v6  ;;  %1130 = vmatprep.mubr.msk.bf16.mxu1 %vm1566_vm0, %v1565_v22  ;;  %v1333_v36 = vld [vmem:[%s1853_s11 + $0x8] sm:$0xff]   ;;  %s930_s30 = sshll.u32 %s1877_s1, 4  ;;  %s1925_s26 = scalar_lea.hbm %s1992_s3, %s1106_s27  ;;  %s1927_s30 = int_to_ptr.vmem [resolvable:$true] %s930_s30 }
  0xa0   : > { %s917_s7 = scalar_lea.sflag [#allocation4], %s1867_s9  ;;  %s1424_s5 = scalar_lea.vmem %s1927_s30, 128 }
  0xa1   : > { %p1425_p9 = scmp.ne.s32.totalorder %s1927_s30, %s1424_s5  ;;  %p2026_p3 = scmp.ne.s32.totalorder %s2018_s25, 0 }
  0xa2   : > { %418 = vmatpush1.bf16.msra.mxu0 %v1312_v7  ;;  %s1567_s19 = smov [#allocation8]  }
  0xa3   : > { %419 = vmatprep.subr.bf16.mxu0 %v1313_v8  ;;  %p1426_p4 = pnand %p1425_p9, %p2026_p3  ;;  %s1428_s23 = sshll.u32 %s1567_s19, 4  ;;  %s1429_s23 = int_to_ptr.vmem [resolvable:$false] %s1428_s23 }
  0xa4   : > { %p1431_p10 = scmp.lt.s32.totalorder %s1927_s30, %s1429_s23 }
  0xa5   : > { %p1427_p7 = pneg %p1426_p4 }
  0xa6   : > { %420 = vmatpush1.bf16.msra.mxu0 %v1315_v9 }
  0xa7   : > { %421 = vmatprep.subr.bf16.mxu0 %v1316_v10 }
  0xaa   : > { %422 = vmatpush1.bf16.msra.mxu0 %v1318_v11 }
  0xab   : > { %423 = vmatprep.subr.bf16.mxu0 %v1319_v12 }
  0xae   : > { %424 = vmatpush1.bf16.msra.mxu0 %v1321_v13 }
  0xaf   : > { %425 = vmatprep.subr.bf16.mxu0 %v1322_v14 }
  0xb2   : > { %426 = vmatpush1.bf16.msra.mxu0 %v1324_v15 }
  0xb3   : > { %427 = vmatprep.subr.bf16.mxu0 %v1325_v16 }
  0xb6   : > { %428 = vmatpush1.bf16.msra.mxu0 %v1327_v17 }
  0xb9   : > { %446 = vmatmul.mubr.bf16.vlgmr.msra.gmra.mrb[0].mxu0 %v1328_v18 }
  0xba   : > { %455 = vmatprep.mubr.bf16.mxu0 %v1564_v3 }
  0xc1   : > { %456 = vmatmul.mubr.bf16.gmra.mrb[4].mxu0 %v1329_v19 }
  0xc2   : > { %465 = vmatprep.mubr.bf16.mxu0 %v1564_v3 }
  0xc9   : > { %466 = vmatmul.mubr.bf16.gmra.mrb[8].mxu0 %v1330_v20 }
  0xca   : > { %475 = vmatprep.mubr.bf16.mxu0 %v1564_v3 }
  0xd1   : > { %476 = vmatmul.mubr.bf16.gmra.mrb[12].mxu0 %v1331_v21 }
 0x18c   : > { %v447_v23 = vpop.f32.mrb[0].mxu0 }
 0x18d   : > { %v449_v24 = vpop.f32.mrb[1].mxu0 }
 0x18e   : > { %v451_v25 = vpop.f32.mrb[2].mxu0 }
 0x18f   : > { %v486_v26 = vpack.c.bf16 %v451_v25, %v447_v23  ;;  %v453_v27 = vpop.f32.mrb[3].mxu0 }
 0x190   : > { %v487_v28 = vpack.c.bf16 %v453_v27, %v449_v24 }
 0x191   : > { %1129 = vmatpush3.bf16.msra.mxu1 %v486_v26 }
 0x192   : > { %1134 = vmatprep.subr.bf16.mxu1 %v1565_v22 }
 0x194   : > { %1131 = vmatmul.mubr.msk.bf16.vlgmr.msra.gmra.mrb[0].mxu1 %vm504_vm1, %v1332_v29  ;;  %v457_v30 = vpop.f32.mrb[4].mxu0 }
 0x195   : > { %1135 = vmatpush3.bf16.msra.mxu1 %v487_v28  ;;  %v459_v31 = vpop.f32.mrb[5].mxu0  ;;  %1136 = vmatprep.mubr.msk.bf16.mxu1 %vm1566_vm0, %v1565_v22 }
 0x196   : > { %v461_v32 = vpop.f32.mrb[6].mxu0  ;;  %1140 = vmatprep.subr.bf16.mxu1 %v1565_v22 }
 0x197   : > { %v488_v33 = vpack.c.bf16 %v461_v32, %v457_v30  ;;  %v463_v34 = vpop.f32.mrb[7].mxu0 }
 0x198   : > { %v489_v35 = vpack.c.bf16 %v463_v34, %v459_v31 }
 0x19c   : > { %1137 = vmatmul.mubr.msk.bf16.vlgmr.msra.gmra.mrb[4].mxu1 %vm504_vm1, %v1333_v36  ;;  %v467_v37 = vpop.f32.mrb[8].mxu0 }
 0x19d   : > { %1141 = vmatpush3.bf16.msra.mxu1 %v488_v33  ;;  %1142 = vmatprep.mubr.msk.bf16.mxu1 %vm1566_vm0, %v1565_v22  ;;  %v469_v38 = vpop.f32.mrb[9].mxu0 }
 0x19e   : > { %1146 = vmatprep.subr.bf16.mxu1 %v1565_v22  ;;  %v471_v39 = vpop.f32.mrb[10].mxu0 }
 0x19f   : > { %v490_v40 = vpack.c.bf16 %v471_v39, %v467_v37  ;;  %v473_v41 = vpop.f32.mrb[11].mxu0 }
 0x1a0   : > { %v491_v42 = vpack.c.bf16 %v473_v41, %v469_v38 }
 0x1a4   : > { %1143 = vmatmul.mubr.msk.bf16.vlgmr.msra.gmra.mrb[8].mxu1 %vm504_vm1, %v1332_v29  ;;  %v477_v43 = vpop.f32.mrb[12].mxu0 }
 0x1a5   : > { %1147 = vmatpush3.bf16.msra.mxu1 %v489_v35  ;;  %1148 = vmatprep.mubr.msk.bf16.mxu1 %vm1566_vm0, %v1565_v22  ;;  %v479_v44 = vpop.f32.mrb[13].mxu0 }
 0x1a6   : > { %1152 = vmatprep.subr.bf16.mxu1 %v1565_v22  ;;  %v481_v45 = vpop.f32.mrb[14].mxu0 }
 0x1a7   : > { %v492_v46 = vpack.c.bf16 %v481_v45, %v477_v43  ;;  %v483_v47 = vpop.f32.mrb[15].mxu0 }
 0x1a8   : > { %v493_v48 = vpack.c.bf16 %v483_v47, %v479_v44 }
 0x1ac   : > { %1149 = vmatmul.mubr.msk.bf16.vlgmr.msra.gmra.mrb[12].mxu1 %vm504_vm1, %v1333_v36 }
 0x1ad   : > { %1153 = vmatpush3.bf16.msra.mxu1 %v490_v40  ;;  %1154 = vmatprep.mubr.msk.bf16.mxu1 %vm1566_vm0, %v1565_v22 }
 0x1ae   : > { %1158 = vmatprep.subr.bf16.mxu1 %v1565_v22 }
 0x1b4   : > { %1155 = vmatmul.mubr.msk.bf16.vlgmr.msra.gmra.mrb[16].mxu1 %vm504_vm1, %v1332_v29 }
 0x1b5   : > { %1159 = vmatpush3.bf16.msra.mxu1 %v491_v42  ;;  %1160 = vmatprep.mubr.msk.bf16.mxu1 %vm1566_vm0, %v1565_v22 }
 0x1b6   : > { %1164 = vmatprep.subr.bf16.mxu1 %v1565_v22 }
 0x1bc   : > { %1161 = vmatmul.mubr.msk.bf16.vlgmr.msra.gmra.mrb[20].mxu1 %vm504_vm1, %v1333_v36 }
 0x1bd   : > { %1165 = vmatpush3.bf16.msra.mxu1 %v492_v46  ;;  %1166 = vmatprep.mubr.msk.bf16.mxu1 %vm1566_vm0, %v1565_v22 }
 0x1be   : > { %1170 = vmatprep.subr.bf16.mxu1 %v1565_v22 }
 0x1c4   : > { %1167 = vmatmul.mubr.msk.bf16.vlgmr.msra.gmra.mrb[24].mxu1 %vm504_vm1, %v1332_v29 }
 0x1c5   : > { %1171 = vmatpush3.bf16.msra.mxu1 %v493_v48  ;;  %1172 = vmatprep.mubr.msk.bf16.mxu1 %vm1566_vm0, %v1565_v22 }
 0x1cc   : > { %1173 = vmatmul.mubr.msk.bf16.vlgmr.msra.gmra.mrb[28].mxu1 %vm504_vm1, %v1333_v36 }
 0x267   : > { %v542_v49 = vpop.f32.mrb[0].mxu1 }
 0x268   : > { %v1132_v50 = vpop.f32.mrb[1].mxu1  ;;  %v598_v54 = vand.u32 2147483647, %v542_v49 }
 0x269   : > { %v545_v51 = vpop.f32.mrb[2].mxu1 }
 0x26a   : > { %v1133_v52 = vpop.f32.mrb[3].mxu1  ;;  %v599_v58 = vand.u32 2147483647, %v545_v51 }
 0x26f   : > { %v591_v53 = vpop.f32.mrb[4].mxu1 }
 0x270   : > { %v600_v55 = vand.u32 2147483647, %v591_v53  ;;  %v1138_v56 = vpop.f32.mrb[5].mxu1 }
 0x271   : > { %v594_v57 = vpop.f32.mrb[6].mxu1 }
 0x272   : > { %v601_v59 = vand.u32 2147483647, %v594_v57  ;;  %v1139_v60 = vpop.f32.mrb[7].mxu1  ;;  %v602_v61 = vadd.f32 %v600_v55, %v598_v54 }
 0x274   : > { %v603_v62 = vadd.f32 %v601_v59, %v599_v58 }
 0x276   : > { %v604_v63 = vadd.f32 %v603_v62, %v602_v61 }
 0x277   : > { %v649_v0 = vpop.f32.mrb[8].mxu1 }
 0x278   : > { %605 = vadd.xlane.f32.xlu0 %v604_v63  ;;  %v1144_v1 = vpop.f32.mrb[9].mxu1  ;;  %v697_v5 = vand.u32 2147483647, %v649_v0 }
 0x279   : > { %v652_v2 = vpop.f32.mrb[10].mxu1 }
 0x27a   : > { %v1145_v3 = vpop.f32.mrb[11].mxu1  ;;  %v698_v9 = vand.u32 2147483647, %v652_v2 }
 0x27f   : > { %v690_v4 = vpop.f32.mrb[12].mxu1 }
 0x280   : > { %v699_v6 = vand.u32 2147483647, %v690_v4  ;;  %v1150_v7 = vpop.f32.mrb[13].mxu1 }
 0x281   : > { %v693_v8 = vpop.f32.mrb[14].mxu1 }
 0x282   : > { %v701_v10 = vadd.f32 %v699_v6, %v697_v5  ;;  %v700_v11 = vand.u32 2147483647, %v693_v8  ;;  %v1151_v12 = vpop.f32.mrb[15].mxu1 }
 0x284   : > { %v702_v13 = vadd.f32 %v700_v11, %v698_v9  ;;  %v912_v9 = vld [vmem:[%s1877_s1] sm:$0xff] }
 0x286   : > { %v703_v14 = vadd.f32 %v702_v13, %v701_v10 }
 0x287   : > { %v748_v15 = vpop.f32.mrb[16].mxu1 }
 0x288   : > { %704 = vadd.xlane.f32.xlu0 %v703_v14  ;;  %v1156_v16 = vpop.f32.mrb[17].mxu1  ;;  %v796_v20 = vand.u32 2147483647, %v748_v15 }
 0x289   : > { %v751_v17 = vpop.f32.mrb[18].mxu1 }
 0x28a   : > { %v1157_v18 = vpop.f32.mrb[19].mxu1  ;;  %v797_v24 = vand.u32 2147483647, %v751_v17 }
 0x28f   : > { %v789_v19 = vpop.f32.mrb[20].mxu1 }
 0x290   : > { %v798_v21 = vand.u32 2147483647, %v789_v19  ;;  %v1162_v22 = vpop.f32.mrb[21].mxu1 }
 0x291   : > { %v792_v23 = vpop.f32.mrb[22].mxu1 }
 0x292   : > { %v799_v25 = vand.u32 2147483647, %v792_v23  ;;  %v1163_v26 = vpop.f32.mrb[23].mxu1  ;;  %v800_v27 = vadd.f32 %v798_v21, %v796_v20 }
 0x294   : > { %v801_v28 = vadd.f32 %v799_v25, %v797_v24 }
 0x296   : > { %v802_v29 = vadd.f32 %v801_v28, %v800_v27 }
 0x297   : > { %v847_v30 = vpop.f32.mrb[24].mxu1 }
 0x298   : > { %803 = vadd.xlane.f32.xlu1 %v802_v29  ;;  %v1168_v31 = vpop.f32.mrb[25].mxu1  ;;  %v895_v35 = vand.u32 2147483647, %v847_v30 }
 0x299   : > { %v850_v32 = vpop.f32.mrb[26].mxu1 }
 0x29a   : > { %v1169_v33 = vpop.f32.mrb[27].mxu1  ;;  %v896_v39 = vand.u32 2147483647, %v850_v32 }
 0x29f   : > { %v888_v34 = vpop.f32.mrb[28].mxu1 }
 0x2a0   : > { %v897_v36 = vand.u32 2147483647, %v888_v34  ;;  %v1174_v37 = vpop.f32.mrb[29].mxu1 }
 0x2a1   : > { %v891_v38 = vpop.f32.mrb[30].mxu1 }
 0x2a2   : > { %v899_v40 = vadd.f32 %v897_v36, %v895_v35  ;;  %v898_v41 = vand.u32 2147483647, %v891_v38  ;;  %v1175_v42 = vpop.f32.mrb[31].mxu1 }
 0x2a4   : > { %v900_v43 = vadd.f32 %v898_v41, %v896_v39 }
 0x2a6   : > { %v901_v44 = vadd.f32 %v900_v43, %v899_v40 }
 0x2a8   : > { %902 = vadd.xlane.f32.xlu1 %v901_v44 }
 0x305   : > { %v606_v45 = vpop.xlane.xlu0 %605 }
 0x306   : > { %v607_v46 = vrot.slane %v606_v45, 4 }
 0x308   : > { %v608_v47 = vadd.f32 %v607_v46, %v606_v45 }
 0x30a   : > { %v609_v48 = vrot.slane %v608_v47, 2 }
 0x30c   : > { %v610_v49 = vadd.f32 %v609_v48, %v608_v47 }
 0x30e   : > { %v611_v50 = vrot.slane %v610_v49, 1 }
 0x310   : > { %v612_v51 = vadd.f32 %v611_v50, %v610_v49 }
 0x312   : > { %1176 = vpush %v612_v51 }
 0x315   : > { %v705_v52 = vpop.xlane.xlu0 %704 }
 0x316   : > { %v706_v53 = vrot.slane %v705_v52, 4 }
 0x318   : > { %v707_v54 = vadd.f32 %v706_v53, %v705_v52 }
 0x31a   : > { %v708_v55 = vrot.slane %v707_v54, 2 }
 0x31c   : > { %v709_v56 = vadd.f32 %v708_v55, %v707_v54 }
 0x31e   : > { %v710_v57 = vrot.slane %v709_v56, 1 }
 0x320   : > { %v711_v58 = vadd.f32 %v710_v57, %v709_v56 }
 0x322   : > { %1178 = vpush %v711_v58 }
 0x325   : > { %v804_v59 = vpop.xlane.xlu1 %803 }
 0x326   : > { %v805_v60 = vrot.slane %v804_v59, 4 }
 0x328   : > { %v806_v61 = vadd.f32 %v805_v60, %v804_v59 }
 0x32a   : > { %v807_v62 = vrot.slane %v806_v61, 2 }
 0x32c   : > { %v808_v63 = vadd.f32 %v807_v62, %v806_v61 }
 0x32e   : > { %v809_v0 = vrot.slane %v808_v63, 1 }
 0x330   : > { %v810_v1 = vadd.f32 %v809_v0, %v808_v63 }
 0x332   : > { %1180 = vpush %v810_v1 }
 0x335   : > { %v903_v2 = vpop.xlane.xlu1 %902 }
 0x336   : > { %v904_v3 = vrot.slane %v903_v2, 4 }
 0x338   : > { %v905_v4 = vadd.f32 %v904_v3, %v903_v2 }
 0x33a   : > { %v906_v5 = vrot.slane %v905_v4, 2 }
 0x33c   : > { %v907_v6 = vadd.f32 %v906_v5, %v905_v4 }
 0x33e   : > { %v908_v7 = vrot.slane %v907_v6, 1 }
 0x340   : > { %v909_v8 = vadd.f32 %v908_v7, %v907_v6 }
 0x342   : > { %1182 = vpush %v909_v8 }
 0x343   : > { %s1177_s18 = spop %1176 }
 0x353   : > { %s1179_s28 = spop %1178 }
 0x354   : > { %s713_s4 = sadd.f32 %s1179_s28, %s1177_s18  ;;  %s1430_s18 = scalar_lea.vmem %s1429_s23, 256 }
 0x355   : > { %p1432_p13 = scmp.lt.s32.totalorder %s1430_s18, %s1424_s5 }
 0x357   : > { %p1433_p12 = por %p1432_p13, %p1431_p10 }
 0x359   : > { %p1434_p6 = pnand %p1433_p12, %p1427_p7 }
 0x363   : > { %s1181_s29 = spop %1180 }
 0x364   : > { %s812_s24 = sadd.f32 %s1181_s29, %s713_s4 }
 0x373   : > { %s1183_s6 = spop %1182 }
 0x374   : > { %s911_s11 = sadd.f32 %s1183_s6, %s812_s24 }
 0x376   : > { %v913_v10 = vstv %s911_s11 }
 0x377   : > { %v914_v11 = vadd.f32 %v913_v10, %v912_v9 }
 0x379   : > { %915 = vst [vmem:[%s1877_s1] sm:$0xff] %v914_v11 }
 0x37a   : > { %1437 = shalt.err (!%p1434_p6)
}
 0x37b   : > { %s1438_s9 = scalar_lea.hbm %s1925_s26, 128  ;;  %s1442_s29 = scalar_lea.hbm %s1992_s3, 256 }
 0x37c   : > { %p1439_p8 = scmp.ne.s32.totalorder %s1925_s26, %s1438_s9  ;;  %p1443_p1 = scmp.lt.u32.totalorder %s1925_s26, %s1992_s3 }
 0x37d   : > { %p1444_p0 = scmp.lt.u32.totalorder %s1442_s29, %s1438_s9  ;;  %p1446_p9 = scmp.lt.u32.totalorder %s1438_s9, %s1925_s26 }
 0x37e   : > { %p1440_p2 = pnand %p1439_p8, %p2026_p3 }
 0x37f   : > { %p1445_p11 = por %p1444_p0, %p1443_p1 }
 0x380   : > { %p1441_p5 = pneg %p1440_p2 }
 0x381   : > { %p1447_p4 = por %p1446_p9, %p1445_p11 }
 0x383   : > { %p1448_p7 = pnand %p1447_p4, %p1441_p5 }
 0x385   : > { %1451 = shalt.err (!%p1448_p7)
}
 0x386   : > { %1190 = dma.vmem_to_hbm [thread:$0]  (%p2026_p3), %s1927_s30, 128, %s1925_s26, %s917_s7  }
 0x387 PF: > { %p1207_p10 = scmp.ge.s32.totalorder %s1554_s22, 2  ;;  %s942_s6 = sand.u32 1, %s1514_s12  }
 0x388   : > { %p2027_p13 = scmp.ne.s32.totalorder %s2019_s10, 0  ;;  %s943_s27 = scalar_lea.sflag [#allocation4], %s942_s6 }
 0x38a   : > { %p1203_p12 = pnand %p1207_p10, %p2027_p13 }
 0x38c   : > { %1509 = dma.done.wait (!%p1203_p12), %s943_s27, 128  }
 0x38d   : > { %1511 = vsyncadd (!%p1203_p12), %s943_s27, 4294967168  ;;  %s22_s22 = sadd.s32 1, %s1554_s22   ;;  %s2028_s25 = sld [smem:[#allocation14_spill]] }
 0x38e   : > { %p19_p6 = scmp.ge.s32.totalorder %s22_s22, 10   ;;  %s2029_s11 = sld [smem:[#allocation13_spill]] }
 0x38f   : > { %s2030_s30 = sld [smem:[#allocation15_spill]]  ;;  %s2031_s12 = smov %s1518_s13 }
 0x390   : > { %s2032_s13 = smov %s1522_s14  ;;  %s2033_s14 = smov %s1804_s8 }
 0x391   : > { %s2034_s15 = smov %s1530_s16  ;;  %s2035_s16 = smov %s1534_s17 }
 0x392   : > { %s2037_s18 = smov %s1546_s20  ;;  %s2038_s19 = smov %s1550_s21 }
 0x393   : > { %s2036_s17 = smov %s2028_s25  ;;  %21 = sbr.rel (!%p19_p6) target bundleno = 14 (0xe), region = 106 }
 0x394   : > { %s2039_s20 = smov %s2029_s11 }
 0x395   : > { %s2040_s21 = smov %s2030_s30 }
 0x39a   :  { %948 = vsyncpa [#allocation3], 1 }
 0x39b   :  { %950 = vsyncpa [#allocation3 + $0x1], 1 }
 0x39c   :  { %951 = vsyncpa [#allocation6], 1 }
 0x39d   :  { %953 = vsyncpa [#allocation6 + $0x1], 1 }
 0x39e   :  { %954 = vsyncpa [#allocation4], 1 }
 0x39f   :  { %956 = vsyncpa [#allocation4 + $0x1], 1 }

</bundles_post_ra>
